<compile_context>
chip_gen: v5e
topology: v5e:2x2
jax: 0.10.0
libtpu: 0.0.40
codegen_flags: <defaults>
</compile_context>

<pallas_src>
import functools
import math

import jax
import jax.numpy as jnp
import numpy as np
from jax.experimental import pallas as pl
from jax.experimental.pallas import tpu as pltpu


def _cdc_cross_kernel(xp_ref, w_ref, o_ref, *, H, W):
    """One batch tile per grid step.

    xp_ref : (TB, H+2, W+2, C_in)   zero-padded NHWC input tile
    w_ref  : (5*C_in, C_out_pad)    fused cross + (-theta*diff) weights
    o_ref  : (TB, H, W, C_out_pad)
    """
    TB = o_ref.shape[0]
    C_in = xp_ref.shape[-1]
    C_out_p = o_ref.shape[-1]
    M = TB * H * W

    # The 5 non-zero taps of the cross; each shifted view is built exactly once.
    taps = (
        xp_ref[:, 0:H,     1:1 + W, :],   # (ky, kx) = (0, 1)  top
        xp_ref[:, 1:1 + H, 0:W,     :],   # (1, 0)             left
        xp_ref[:, 1:1 + H, 1:1 + W, :],   # (1, 1)             center (diff folded)
        xp_ref[:, 1:1 + H, 2:2 + W, :],   # (1, 2)             right
        xp_ref[:, 2:2 + H, 1:1 + W, :],   # (2, 1)             bottom
    )
    # Fused im2col operand: one matmul with contraction depth 5*C_in instead
    # of 10 separate K=C_in MXU pushes.
    im2col = jnp.concatenate([t.reshape(M, C_in) for t in taps], axis=-1)

    out = jnp.dot(im2col, w_ref[...],
                  preferred_element_type=jnp.float32)          # (M, C_out_pad)
    o_ref[...] = out.reshape(TB, H, W, C_out_p).astype(o_ref.dtype)


def _choose_batch_tile(N, H, W, C_in, C_out_p, in_itemsize, out_itemsize,
                       vmem_budget=8 * 1024 * 1024):
    """Largest batch tile whose double-buffered blocks fit a VMEM budget,
    preferring >= 2 grid steps so v7x's two TensorCores / the software
    pipeline have work to split."""
    def step_bytes(tb):
        in_b = tb * (H + 2) * (W + 2) * C_in * in_itemsize
        out_b = tb * H * W * C_out_p * out_itemsize
        return 2 * (in_b + out_b)        # pipeline double-buffers each block
    divisors = [d for d in range(1, N + 1) if N % d == 0]
    fitting = [d for d in divisors if step_bytes(d) <= vmem_budget] or [1]
    multi = [d for d in fitting if N // d >= 2]
    return max(multi) if multi else max(fitting)


def conv2d_hori_veri_cross(x_nchw, weight, theta=0.7, *, compute_dtype=None):
    """x_nchw: (N, C_in, H, W); weight: (C_out, C_in, 1, 5)."""
    N, C_in, H, W = x_nchw.shape
    C_out = weight.shape[0]
    out_dtype = x_nchw.dtype
    if compute_dtype is None:
        compute_dtype = x_nchw.dtype      # pass jnp.bfloat16 on v6e / v7x
    compute_dtype = np.dtype(compute_dtype)

    # --- parameter plumbing (plain-JAX glue, mirrors the torch.cat/.view) ---
    w = weight[:, :, 0, :].astype(jnp.float32)            # (C_out, C_in, 5)
    # Cross positions: (0,1)<-w0, (1,0)<-w1, (1,1)<-w2, (1,2)<-w3, (2,1)<-w4.
    # The 1x1 "diff" conv (padding=0) reads exactly the center pixel of each
    # 3x3 window, so folding -theta*sum(w) into the center tap is exact and
    # removes a whole matmul + subtract from the kernel.
    center = w[..., 2] - jnp.float32(theta) * jnp.sum(w, axis=-1)
    taps = (w[..., 0], w[..., 1], center, w[..., 3], w[..., 4])
    wfused = jnp.concatenate([jnp.transpose(t) for t in taps], axis=0)  # (5*C_in, C_out)

    # Lane-dense output: zero-pad C_out up to a multiple of 128 so the kernel
    # stores full 128-lane vregs (unmasked vst); pad lanes sliced off below.
    C_out_p = max(128, -(-C_out // 128) * 128)
    wfused = jnp.pad(wfused, ((0, 0), (0, C_out_p - C_out))).astype(compute_dtype)

    # NCHW -> NHWC (channels on the lane axis), zero-pad spatial by 1
    # (the padding=1 of the 3x3 conv).
    x_nhwc = jnp.transpose(x_nchw, (0, 2, 3, 1)).astype(compute_dtype)
    x_pad = jnp.pad(x_nhwc, ((0, 0), (1, 1), (1, 1), (0, 0)))

    TB = _choose_batch_tile(N, H, W, C_in, C_out_p,
                            compute_dtype.itemsize, np.dtype(out_dtype).itemsize)
    grid = (N // TB,)
    # TODO(synk): for large H*W add a row-band grid axis with a 2-row halo
    # (manual DMA / pl.Element) so blocks stay inside v7x's 64 MiB VMEM.

    out_nhwc = pl.pallas_call(
        functools.partial(_cdc_cross_kernel, H=H, W=W),
        out_shape=jax.ShapeDtypeStruct((N, H, W, C_out_p), out_dtype),
        grid=grid,
        in_specs=[
            pl.BlockSpec((TB, H + 2, W + 2, C_in), lambda n: (n, 0, 0, 0)),
            pl.BlockSpec((5 * C_in, C_out_p), lambda n: (0, 0)),
        ],
        out_specs=pl.BlockSpec((TB, H, W, C_out_p), lambda n: (n, 0, 0, 0)),
        compiler_params=pltpu.CompilerParams(
            dimension_semantics=("parallel",),
            vmem_limit_bytes=32 * 1024 * 1024),
    )(x_pad, wfused)

    return jnp.transpose(out_nhwc[..., :C_out], (0, 3, 1, 2))   # back to NCHW


def _reference(x_nchw, weight, theta=0.7):
    """Pure-JAX reference mirroring the PyTorch forward."""
    C_out, C_in, _, _ = weight.shape
    w = weight[:, :, 0, :]
    zeros = jnp.zeros((C_out, C_in), w.dtype)
    k3 = jnp.stack(
        [zeros, w[..., 0], zeros,
         w[..., 1], w[..., 2], w[..., 3],
         zeros, w[..., 4], zeros], axis=-1).reshape(C_out, C_in, 3, 3)
    dn = ('NCHW', 'OIHW', 'NCHW')
    out_normal = jax.lax.conv_general_dilated(
        x_nchw, k3, (1, 1), ((1, 1), (1, 1)), dimension_numbers=dn)
    if math.fabs(theta - 0.0) < 1e-8:
        return out_normal
    kdiff = jnp.sum(w, axis=-1)[:, :, None, None]
    out_diff = jax.lax.conv_general_dilated(
        x_nchw, kdiff, (1, 1), ((0, 0), (0, 0)), dimension_numbers=dn)
    return out_normal - theta * out_diff


if __name__ == "__main__":
    key = jax.random.PRNGKey(0)
    kx, kw = jax.random.split(key)

    N, C_in, H, W = 2, 4, 16, 16
    C_out = 4
    theta = 0.7

    x = jax.random.normal(kx, (N, C_in, H, W), dtype=jnp.float32)

    # Deterministic Conv2d-style init for weight of shape (C_out, C_in, 1, 5).
    fan_in = C_in * 1 * 5
    bound = 1.0 / math.sqrt(fan_in)
    weight = jax.random.uniform(
        kw, (C_out, C_in, 1, 5), dtype=jnp.float32,
        minval=-bound, maxval=bound)

    ref = jax.block_until_ready(_reference(x, weight, theta=theta))

    # Default f32 path: strict check against the reference.
    out = jax.block_until_ready(conv2d_hori_veri_cross(x, weight, theta=theta))
    np.testing.assert_allclose(np.asarray(out), np.asarray(ref),
                               rtol=1e-5, atol=1e-5)

    # bf16 compute path (recommended on v6e / v7x): f32 accumulation, looser check.
    out_bf16 = jax.block_until_ready(
        conv2d_hori_veri_cross(x, weight, theta=theta,
                               compute_dtype=jnp.bfloat16))
    np.testing.assert_allclose(np.asarray(out_bf16), np.asarray(ref),
                               rtol=5e-2, atol=5e-2)

    print("KERNEL_OK")
</pallas_src>

<mosaic_0001>
module attributes {stable_mosaic.version = 11 : i64} {
  func.func @_cdc_cross_kernel(%arg0: i32, %arg1: memref<1x18x18x4xf32, #tpu.memory_space<vmem>>, %arg2: memref<20x128xf32, #tpu.memory_space<vmem>>, %arg3: memref<1x16x16x128xf32, #tpu.memory_space<vmem>>) attributes {dimension_semantics = [#tpu.dimension_semantics<parallel>], iteration_bounds = array<i64: 2>, scalar_prefetch = 0 : i64, scratch_operands = 0 : i64, tpu.core_type = #tpu.core_type<tc>, window_params = [{transform_indices = @transform_0, window_bounds = array<i64: 1, 18, 18, 4>}, {pipeline_mode = #tpu.pipeline_mode<synchronous>, transform_indices = @transform_1, window_bounds = array<i64: 20, 128>}, {transform_indices = @transform_2, window_bounds = array<i64: 1, 16, 16, 128>}]} {
    %c0 = arith.constant 0 : index
    %c0_0 = arith.constant 0 : index
    %c1 = arith.constant 1 : index
    %c0_1 = arith.constant 0 : index
    %0 = vector.load %arg1[%c0, %c0_0, %c1, %c0_1] : memref<1x18x18x4xf32, #tpu.memory_space<vmem>>, vector<1x16x16x4xf32>
    %c0_2 = arith.constant 0 : index
    %c1_3 = arith.constant 1 : index
    %c0_4 = arith.constant 0 : index
    %c0_5 = arith.constant 0 : index
    %1 = vector.load %arg1[%c0_2, %c1_3, %c0_4, %c0_5] : memref<1x18x18x4xf32, #tpu.memory_space<vmem>>, vector<1x16x16x4xf32>
    %c0_6 = arith.constant 0 : index
    %c1_7 = arith.constant 1 : index
    %c1_8 = arith.constant 1 : index
    %c0_9 = arith.constant 0 : index
    %2 = vector.load %arg1[%c0_6, %c1_7, %c1_8, %c0_9] : memref<1x18x18x4xf32, #tpu.memory_space<vmem>>, vector<1x16x16x4xf32>
    %c0_10 = arith.constant 0 : index
    %c1_11 = arith.constant 1 : index
    %c2 = arith.constant 2 : index
    %c0_12 = arith.constant 0 : index
    %3 = vector.load %arg1[%c0_10, %c1_11, %c2, %c0_12] : memref<1x18x18x4xf32, #tpu.memory_space<vmem>>, vector<1x16x16x4xf32>
    %c0_13 = arith.constant 0 : index
    %c2_14 = arith.constant 2 : index
    %c1_15 = arith.constant 1 : index
    %c0_16 = arith.constant 0 : index
    %4 = vector.load %arg1[%c0_13, %c2_14, %c1_15, %c0_16] : memref<1x18x18x4xf32, #tpu.memory_space<vmem>>, vector<1x16x16x4xf32>
    %5 = vector.shape_cast %0 : vector<1x16x16x4xf32> to vector<256x4xf32>
    %6 = vector.shape_cast %1 : vector<1x16x16x4xf32> to vector<256x4xf32>
    %7 = vector.shape_cast %2 : vector<1x16x16x4xf32> to vector<256x4xf32>
    %8 = vector.shape_cast %3 : vector<1x16x16x4xf32> to vector<256x4xf32>
    %9 = vector.shape_cast %4 : vector<1x16x16x4xf32> to vector<256x4xf32>
    %10 = tpu.concatenate %5, %6, %7, %8, %9 in 1 : vector<256x4xf32>, vector<256x4xf32>, vector<256x4xf32>, vector<256x4xf32>, vector<256x4xf32> -> vector<256x20xf32>
    %c0_17 = arith.constant 0 : index
    %c0_18 = arith.constant 0 : index
    %11 = vector.load %arg2[%c0_17, %c0_18] : memref<20x128xf32, #tpu.memory_space<vmem>>, vector<20x128xf32>
    %cst = arith.constant dense<0.000000e+00> : vector<256x128xf32>
    %12 = tpu.matmul %10, %11, %cst {dimension_numbers = #tpu.dot_dimension_numbers<[1], [0], [0], [1], [0, 0, 1, 1], [], []>} : vector<256x20xf32>, vector<20x128xf32>, vector<256x128xf32> -> vector<256x128xf32>
    %13 = vector.shape_cast %12 : vector<256x128xf32> to vector<1x16x16x128xf32>
    %c0_19 = arith.constant 0 : index
    %c0_20 = arith.constant 0 : index
    %c0_21 = arith.constant 0 : index
    %c0_22 = arith.constant 0 : index
    %14 = vector.load %arg3[%c0_19, %c0_20, %c0_21, %c0_22] : memref<1x16x16x128xf32, #tpu.memory_space<vmem>>, vector<1x16x16x128xf32>
    tpu.vector_store %arg3[%c0_19, %c0_20, %c0_21, %c0_22], %13 {strides = array<i32>} : memref<1x16x16x128xf32, #tpu.memory_space<vmem>>, vector<1x16x16x128xf32>,
    return
  }
  func.func @transform_0(%arg0: i32) -> (i32, i32, i32, i32) {
    %c0_i32 = arith.constant 0 : i32
    %c0_i32_0 = arith.constant 0 : i32
    %c0_i32_1 = arith.constant 0 : i32
    %c0_i32_2 = arith.constant 0 : i32
    return %arg0, %c0_i32, %c0_i32_0, %c0_i32_1 : i32, i32, i32, i32
  }
  func.func @transform_1(%arg0: i32) -> (i32, i32) {
    %c0_i32 = arith.constant 0 : i32
    %c0_i32_0 = arith.constant 0 : i32
    %c0_i32_1 = arith.constant 0 : i32
    return %c0_i32, %c0_i32_0 : i32, i32
  }
  func.func @transform_2(%arg0: i32) -> (i32, i32, i32, i32) {
    %c0_i32 = arith.constant 0 : i32
    %c0_i32_0 = arith.constant 0 : i32
    %c0_i32_1 = arith.constant 0 : i32
    %c0_i32_2 = arith.constant 0 : i32
    return %arg0, %c0_i32, %c0_i32_0, %c0_i32_1 : i32, i32, i32, i32
  }
}

</mosaic_0001>

<bundles_post_ra>
// kernel: tpu_custom_call.1
= control target key start
LH: loop header
LB: loop body
LE: loop exit
PB: predicated region body
PF: predicated region fallthrough
CT: control target
= control target key end

     0   :  { %7 = vsyncpa [#allocation3], 0  ;;  %s2377_s0 = inlined_call_operand.vmem [shape: f32[2,18,18,4], index: 0, kind: input, shape index: {}]   ;;  %s2378_s1 = inlined_call_operand.vmem [shape: f32[20,128], index: 1, kind: input, shape index: {}]   ;;  %s2379_s2 = inlined_call_operand.hbm [shape: f32[2,16,16,128], index: 2, kind: output, shape index: {}]  }
   0x1   :  { %9 = vsyncpa [#allocation3 + $0x1], 0  ;;  %s1586_s9 = smov 0   ;;  %s1588_s10 = smov 0  }
   0x2   :  { %s1590_s11 = smov 0   ;;  %s1592_s12 = smov 0  }
   0x3 LB: > { %s1607_s13 = sadd.s32 4294967295, %s1564_s12   ;;  %s1275_s14 = sadd.s32 4294967294, %s1564_s12   ;;  %s1564_s12 = sphi %s1592_s12, %s2385_s12   ;;  %s1560_s11 = sphi %s1590_s11, %s2384_s11   ;;  %s1556_s10 = sphi %s1588_s10, %s2383_s10   ;;  %s1552_s9 = sphi %s1586_s9, %s2382_s9  }
   0x4   : > { %s1611_s15 = sadd.s32 1, %s1564_s12   ;;  %s69_s16 = sadd.s32 1, %s1560_s11 }
   0x5   : > { %s66_s17 = ssub.s32 %s1564_s12, %s1611_s15  ;;  %p79_p0 = scmp.ne.s32.totalorder %s1560_s11, %s1556_s10 }
   0x6   : > { %p67_p1 = scmp.eq.s32.totalorder %s66_s17, 0  ;;  %p80_p2 = scmp.eq.s32.totalorder %s1607_s13, 1 }
   0x7   : > { %p85_p3 = scmp.ne.s32.totalorder %s1556_s10, %s1552_s9  ;;  %p86_p4 = scmp.eq.s32.totalorder %s1275_s14, 1 }
   0x8   : > { %s1622_s18 = scalar_select %p67_p1, %s1560_s11, %s69_s16  }
   0x9   : > { %p1624_p5 = por %p80_p2, %p79_p0  ;;  %p1628_p6 = por %p86_p4, %p85_p3 }
   0xa   : > { %p1278_p7 = scmp.ge.s32.totalorder %s1564_s12, 1  ;;  %p115_p8 = scmp.lt.s32.totalorder %s1564_s12, 3 }
   0xc   : > { %p116_p9 = pnand %p1278_p7, %p115_p8 }
   0xd   : > { %p137_p10 = scmp.lt.s32.totalorder (!%p116_p9), %s1607_s13, 1  ;;  %s1566_s26 = smov (!%p116_p9), 4  }
   0xe   : > { %119 = sbr.rel (%p116_p9) target bundleno = 608 (0x260), region = 28  ;;  %s1567_s27 = smov (!%p116_p9), 8  }
   0xf   : > { %s1568_s28 = smov (!%p116_p9), 12   ;;  %s1569_s29 = smov (!%p116_p9), 16  }
  0x10   : > { %s134_s8 = sand.u32 (!%p116_p9), 1, %s1556_s10   ;;  %s1447_s17 = sshll.u32 (!%p116_p9), %s1607_s13, 8 }
  0x11   : > { %s1279_s14 = sshll.u32 (!%p116_p9), %s134_s8, 8  ;;  %s1209_s23 = scalar_lea.hbm (!%p116_p9), %s2379_s2, %s1447_s17 }
  0x12   : > { %s2248_s16 = scalar_lea.vmem (!%p116_p9), [#allocation2], %s1279_s14  ;;  %s1522_s3 = scalar_lea.hbm (!%p116_p9), %s2379_s2, 512 }
  0x13   : > { %s138_s21 = scalar_select %p137_p10, %s1607_s13, 1  ;;  %vm816_vm0 = vcmask 31744   ;;  %vm849_vm1 = vcmask 64512   ;;  %vm1048_vm2 = vcmask 1043456   ;;  %vm882_vm3 = vcmask 97280  }
  0x14   : > { %vm915_vm4 = vcmask 130048   ;;  %vm951_vm5 = vcmask 162816   ;;  %s1210_s24 = sshll.u32 %s2248_s16, 4  ;;  %s1211_s24 = int_to_ptr.vmem [resolvable:$true] %s1210_s24 }
  0x15   : > { %s1457_s22 = smul.u32 432, %s138_s21 }
  0x17   : > { %s1639_s25 = scalar_lea.vmem %s2377_s0, %s1457_s22 }
  0x18   : > { %v1285_v0 = vld [vmem:[%s1639_s25 + $0x48] sm:$0xff]  ;;  %v1283_v1 = vld [vmem:[%s1639_s25 + $0x30] sm:$0xff]  ;;  %v1281_v2 = vld [vmem:[%s1639_s25 + $0x18] sm:$0xff] }
  0x19   : > { %344 = vrot.lane.b32.xlu2 %v1285_v0, %s1566_s26  ;;  %340 = vrot.lane.b32.xlu1 %v1283_v1, %s1566_s26  ;;  %v1286_v3 = vld [vmem:[%s1639_s25 + $0x50] sm:$0xff]  ;;  %v1284_v4 = vld [vmem:[%s1639_s25 + $0x38] sm:$0xff] }
  0x1a   : > { %336 = vrot.lane.b32.xlu0 %v1281_v2, %s1566_s26  ;;  %v1282_v5 = vld [vmem:[%s1639_s25 + $0x20] sm:$0xff]  ;;  %v1289_v6 = vld [vmem:[%s1639_s25 + $0x78] sm:$0xff]  ;;  %v1288_v7 = vld [vmem:[%s1639_s25 + $0x68] sm:$0xff] }
  0x1b   : > { %v1287_v8 = vld [vmem:[%s1639_s25 + $0x60] sm:$0xff]  ;;  %v1292_v9 = vld [vmem:[%s1639_s25 + $0x98] sm:$0xff]  ;;  %v1291_v10 = vld [vmem:[%s1639_s25 + $0x90] sm:$0xff] }
  0x1c   : > { %v1290_v11 = vld [vmem:[%s1639_s25 + $0x80] sm:$0xff]  ;;  %v1294_v13 = vld [vmem:[%s1639_s25 + $0xb0] sm:$0xff]  ;;  %v1293_v14 = vld [vmem:[%s1639_s25 + $0xa8] sm:$0xff] }
  0x1d   : > { %v1295_v12 = vld [vmem:[%s1639_s25 + $0xc0] sm:$0xff]  ;;  %v1297_v16 = vld [vmem:[%s1639_s25 + $0xd8] sm:$0xff]  ;;  %v1296_v17 = vld [vmem:[%s1639_s25 + $0xc8] sm:$0xff] }
  0x1e   : > { %v1298_v15 = vld [vmem:[%s1639_s25 + $0xe0] sm:$0xff]  ;;  %v1301_v18 = vld [vmem:[%s1639_s25 + $0x108] sm:$0xff]  ;;  %v1300_v19 = vld [vmem:[%s1639_s25 + $0xf8] sm:$0xff] }
  0x1f   : > { %v1299_v20 = vld [vmem:[%s1639_s25 + $0xf0] sm:$0xff]  ;;  %v1304_v21 = vld [vmem:[%s1639_s25 + $0x128] sm:$0xff]  ;;  %v1303_v22 = vld [vmem:[%s1639_s25 + $0x120] sm:$0xff] }
  0x20   : > { %v1302_v23 = vld [vmem:[%s1639_s25 + $0x110] sm:$0xff]  ;;  %v1306_v25 = vld [vmem:[%s1639_s25 + $0x140] sm:$0xff]  ;;  %v1305_v26 = vld [vmem:[%s1639_s25 + $0x138] sm:$0xff] }
  0x21   : > { %346 = vrot.lane.b32.xlu2 %v1286_v3, %s1566_s26  ;;  %342 = vrot.lane.b32.xlu1 %v1284_v4, %s1566_s26  ;;  %v1307_v24 = vld [vmem:[%s1639_s25 + $0x150] sm:$0xff]  ;;  %v1309_v28 = vld [vmem:[%s1639_s25 + $0x168] sm:$0xff] }
  0x22   : > { %338 = vrot.lane.b32.xlu0 %v1282_v5, %s1566_s26  ;;  %v1310_v27 = vld [vmem:[%s1639_s25 + $0x170] sm:$0xff]  ;;  %v1308_v29 = vld [vmem:[%s1639_s25 + $0x158] sm:$0xff]  ;;  %v1312_v31 = vld [vmem:[%s1639_s25 + $0x188] sm:$0xff] }
  0x23   : > { %v1313_v30 = vld [vmem:[%s1639_s25 + $0x19] sm:$0xff]  ;;  %v1711_v34 = vld [vmem:[%s1639_s25 + $0x31] sm:$0xff]  ;;  %v1314_v35 = vld [vmem:[%s1639_s25 + $0x21] sm:$0xff] }
  0x24   : > { %v1311_v32 = vld [vmem:[%s1639_s25 + $0x180] sm:$0xff]  ;;  %v1727_v39 = vld [vmem:[%s1639_s25 + $0x51] sm:$0xff]  ;;  %v1730_v40 = vld [vmem:[%s1639_s25 + $0x49] sm:$0xff] }
  0x25   : > { %v1708_v33 = vld [vmem:[%s1639_s25 + $0x39] sm:$0xff]  ;;  %v1724_v38 = vld [vmem:[%s1639_s25 + $0x61] sm:$0xff]  ;;  %v1747_v44 = vld [vmem:[%s1639_s25 + $0x69] sm:$0xff] }
  0x26   : > { %v1741_v42 = vld [vmem:[%s1639_s25 + $0x81] sm:$0xff]  ;;  %v1744_v43 = vld [vmem:[%s1639_s25 + $0x79] sm:$0xff]  ;;  %v1758_v46 = vld [vmem:[%s1639_s25 + $0xa9] sm:$0xff] }
  0x27   : > { %v1761_v47 = vld [vmem:[%s1639_s25 + $0x99] sm:$0xff]  ;;  %v1323_v48 = vld [vmem:[%s1639_s25 + $0x91] sm:$0xff]  ;;  %v1777_v53 = vld [vmem:[%s1639_s25 + $0xc9] sm:$0xff] }
  0x28   : > { %v1780_v54 = vld [vmem:[%s1639_s25 + $0xc1] sm:$0xff]  ;;  %v1783_v55 = vld [vmem:[%s1639_s25 + $0xb1] sm:$0xff]  ;;  %v1803_v62 = vld [vmem:[%s1639_s25 + $0xd9] sm:$0xff] }
  0x29   : > { %352 = vrot.lane.b32.xlu2 %v1289_v6, %s1566_s26  ;;  %350 = vrot.lane.b32.xlu1 %v1288_v7, %s1566_s26  ;;  %v1331_v60 = vld [vmem:[%s1639_s25 + $0xf1] sm:$0xff]  ;;  %v1800_v61 = vld [vmem:[%s1639_s25 + $0xe1] sm:$0xff] }
  0x2a   : > { %348 = vrot.lane.b32.xlu0 %v1287_v8, %s1566_s26  ;;  %v1369_v2 = vld [vmem:[%s1639_s25 + $0x13a] sm:$0xff] }
  0x2b   : > { %v1361_v3 = vld [vmem:[%s1639_s25 + $0xda] sm:$0xff] }
  0x2c   : > { %v1819_v4 = vld [vmem:[%s1639_s25 + $0x139] sm:$0xff] }
  0x31   : > { %358 = vrot.lane.b32.xlu2 %v1292_v9, %s1566_s26  ;;  %356 = vrot.lane.b32.xlu1 %v1291_v10, %s1566_s26  ;;  %v1345_v9 = vld [vmem:[%s1639_s25 + $0x1a] sm:$0xff]  ;;  %v1401_v10 = vld [vmem:[%s1639_s25 + $0x151] sm:$0xff] }
  0x32   : > { %354 = vrot.lane.b32.xlu0 %v1290_v11, %s1566_s26 }
  0x39   : > { %364 = vrot.lane.b32.xlu2 %v1295_v12, %s1566_s26  ;;  %362 = vrot.lane.b32.xlu1 %v1294_v13, %s1566_s26 }
  0x3a   : > { %360 = vrot.lane.b32.xlu0 %v1293_v14, %s1566_s26 }
  0x41   : > { %370 = vrot.lane.b32.xlu2 %v1298_v15, %s1566_s26  ;;  %368 = vrot.lane.b32.xlu1 %v1297_v16, %s1566_s26  ;;  %v1845_v15 = vld [vmem:[%s1639_s25 + $0x141] sm:$0xff] }
  0x42   : > { %366 = vrot.lane.b32.xlu0 %v1296_v17, %s1566_s26  ;;  %v1353_v16 = vld [vmem:[%s1639_s25 + $0x7a] sm:$0xff] }
  0x49   : > { %376 = vrot.lane.b32.xlu2 %v1301_v18, %s1566_s26  ;;  %374 = vrot.lane.b32.xlu1 %v1300_v19, %s1566_s26 }
  0x4a   : > { %372 = vrot.lane.b32.xlu0 %v1299_v20, %s1566_s26  ;;  %v1370_v20 = vld [vmem:[%s1639_s25 + $0x142] sm:$0xff] }
  0x51   : > { %382 = vrot.lane.b32.xlu2 %v1304_v21, %s1566_s26  ;;  %380 = vrot.lane.b32.xlu1 %v1303_v22, %s1566_s26  ;;  %v1362_v21 = vld [vmem:[%s1639_s25 + $0xe2] sm:$0xff] }
  0x52   : > { %378 = vrot.lane.b32.xlu0 %v1302_v23, %s1566_s26  ;;  %v171_v23 = vld [vmem:[%s1639_s25 + $0x159] sm:$0xff] }
  0x59   : > { %388 = vrot.lane.b32.xlu2 %v1307_v24, %s1566_s26  ;;  %386 = vrot.lane.b32.xlu1 %v1306_v25, %s1566_s26 }
  0x5a   : > { %384 = vrot.lane.b32.xlu0 %v1305_v26, %s1566_s26 }
  0x61   : > { %394 = vrot.lane.b32.xlu2 %v1310_v27, %s1566_s26  ;;  %392 = vrot.lane.b32.xlu1 %v1309_v28, %s1566_s26  ;;  %v1346_v27 = vld [vmem:[%s1639_s25 + $0x22] sm:$0xff]  ;;  %v1394_v28 = vld [vmem:[%s1639_s25 + $0xf9] sm:$0xff] }
  0x62   : > { %390 = vrot.lane.b32.xlu0 %v1308_v29, %s1566_s26  ;;  %v142_v29 = vld [vmem:[%s1639_s25 + $0x1] sm:$0xff] }
  0x69   : > { %464 = vrot.lane.b32.xlu2 %v1313_v30, %s1567_s27  ;;  %398 = vrot.lane.b32.xlu1 %v1312_v31, %s1566_s26 }
  0x6a   : > { %396 = vrot.lane.b32.xlu0 %v1311_v32, %s1566_s26  ;;  %s1198_s26 = scalar_lea.sflag [#allocation3], %s134_s8 }
  0x71   : > { %470 = vrot.lane.b32.xlu2 %v1708_v33, %s1567_s27  ;;  %468 = vrot.lane.b32.xlu1 %v1711_v34, %s1567_s27 }
  0x72   : > { %466 = vrot.lane.b32.xlu0 %v1314_v35, %s1567_s27 }
  0x73   : > { %v345_v36 = vpop.permute.xlu2 %344 }
  0x74   : > { %v1721_v37 = vsel %vm816_vm0, %v1711_v34, %v345_v36 }
  0x79   : > { %476 = vrot.lane.b32.xlu2 %v1724_v38, %s1567_s27  ;;  %474 = vrot.lane.b32.xlu1 %v1727_v39, %s1567_s27 }
  0x7a   : > { %472 = vrot.lane.b32.xlu0 %v1730_v40, %s1567_s27 }
  0x7b   : > { %v1738_v41 = vpop.permute.xlu2 %346 }
  0x81   : > { %482 = vrot.lane.b32.xlu2 %v1741_v42, %s1567_s27  ;;  %480 = vrot.lane.b32.xlu1 %v1744_v43, %s1567_s27 }
  0x82   : > { %478 = vrot.lane.b32.xlu0 %v1747_v44, %s1567_s27 }
  0x83   : > { %v1755_v45 = vpop.permute.xlu2 %352 }
  0x89   : > { %488 = vrot.lane.b32.xlu2 %v1758_v46, %s1567_s27  ;;  %486 = vrot.lane.b32.xlu1 %v1761_v47, %s1567_s27 }
  0x8a   : > { %484 = vrot.lane.b32.xlu0 %v1323_v48, %s1567_s27 }
  0x8b   : > { %v1769_v49 = vpop.permute.xlu2 %358  ;;  %v341_v50 = vpop.permute.xlu1 %340 }
  0x8c   : > { %v1772_v51 = vsel %vm816_vm0, %v1313_v30, %v341_v50  ;;  %v1774_v52 = vpop.permute.xlu0 %336  ;;  %v1878_v30 = vld [vmem:[%s1639_s25 + $0x109] sm:$0xff] }
  0x8d   : > { %v817_v31 = vsel %vm816_vm0, %v142_v29, %v1774_v52  ;;  %v1925_v29 = vld [vmem:[%s1639_s25 + $0x169] sm:$0xff] }
  0x91   : > { %494 = vrot.lane.b32.xlu2 %v1777_v53, %s1567_s27  ;;  %492 = vrot.lane.b32.xlu1 %v1780_v54, %s1567_s27 }
  0x92   : > { %490 = vrot.lane.b32.xlu0 %v1783_v55, %s1567_s27 }
  0x93   : > { %v1791_v56 = vpop.permute.xlu2 %364  ;;  %v343_v57 = vpop.permute.xlu1 %342 }
  0x94   : > { %v1794_v58 = vsel %vm816_vm0, %v1314_v35, %v343_v57  ;;  %v1796_v59 = vpop.permute.xlu0 %338  ;;  %v1354_v57 = vld [vmem:[%s1639_s25 + $0x82] sm:$0xff] }
  0x99   : > { %500 = vrot.lane.b32.xlu2 %v1331_v60, %s1567_s27  ;;  %498 = vrot.lane.b32.xlu1 %v1800_v61, %s1567_s27 }
  0x9a   : > { %496 = vrot.lane.b32.xlu0 %v1803_v62, %s1567_s27 }
  0x9b   : > { %v1810_v63 = vpop.permute.xlu2 %370  ;;  %v1812_v0 = vpop.permute.xlu1 %350 }
  0x9c   : > { %v1814_v1 = vpop.permute.xlu0 %348 }
  0xa1   : > { %640 = vrot.lane.b32.xlu2 %v1369_v2, %s1568_s28  ;;  %624 = vrot.lane.b32.xlu1 %v1361_v3, %s1568_s28 }
  0xa2   : > { %512 = vrot.lane.b32.xlu0 %v1819_v4, %s1567_s27 }
  0xa3   : > { %v377_v5 = vpop.permute.xlu2 %376  ;;  %v1825_v6 = vpop.permute.xlu1 %356 }
  0xa4   : > { %v1828_v7 = vsel %vm816_vm0, %v1331_v60, %v377_v5  ;;  %v1830_v8 = vpop.permute.xlu0 %354  ;;  %v1371_v5 = vld [vmem:[%s1639_s25 + $0x152] sm:$0xff] }
  0xa9   : > { %592 = vrot.lane.b32.xlu2 %v1345_v9, %s1568_s28  ;;  %768 = vrot.lane.b32.xlu1 %v1401_v10, %s1569_s29  ;;  %v1363_v9 = vld [vmem:[%s1639_s25 + $0xf2] sm:$0xff] }
  0xaa   : > { %752 = vrot.lane.b32.xlu0 %v1331_v60, %s1569_s29 }
  0xab   : > { %v1837_v11 = vpop.permute.xlu2 %382  ;;  %v1839_v12 = vpop.permute.xlu1 %362 }
  0xac   : > { %v361_v13 = vpop.permute.xlu0 %360 }
  0xad   : > { %v1842_v14 = vsel %vm816_vm0, %v1323_v48, %v361_v13  ;;  %v823_v13 = vsel %vm816_vm0, %v1730_v40, %v1814_v1  ;;  %v1931_v1 = vld [vmem:[%s1639_s25 + $0x171] sm:$0xff] }
  0xb1   : > { %720 = vrot.lane.b32.xlu2 %v1711_v34, %s1569_s29  ;;  %514 = vrot.lane.b32.xlu1 %v1845_v15, %s1567_s27 }
  0xb2   : > { %608 = vrot.lane.b32.xlu0 %v1353_v16, %s1568_s28 }
  0xb3   : > { %v1853_v17 = vpop.permute.xlu2 %388  ;;  %v1855_v18 = vpop.permute.xlu1 %368 }
  0xb4   : > { %v1857_v19 = vpop.permute.xlu0 %366 }
  0xb9   : > { %642 = vrot.lane.b32.xlu2 %v1370_v20, %s1568_s28  ;;  %626 = vrot.lane.b32.xlu1 %v1362_v21, %s1568_s28 }
  0xba   : > { %736 = vrot.lane.b32.xlu0 %v1323_v48, %s1569_s29 }
  0xbb   : > { %v395_v22 = vpop.permute.xlu2 %394  ;;  %v1865_v24 = vpop.permute.xlu1 %374 }
  0xbc   : > { %v1868_v25 = vsel %vm816_vm0, %v171_v23, %v395_v22  ;;  %v1870_v26 = vpop.permute.xlu0 %372 }
  0xc1   : > { %594 = vrot.lane.b32.xlu2 %v1346_v27, %s1568_s28  ;;  %770 = vrot.lane.b32.xlu1 %v171_v23, %s1569_s29  ;;  %v1347_v27 = vld [vmem:[%s1639_s25 + $0x32] sm:$0xff] }
  0xc2   : > { %754 = vrot.lane.b32.xlu0 %v1394_v28, %s1569_s29 }
  0xc3   : > { %v465_v32 = vpop.permute.xlu2 %464  ;;  %v381_v34 = vpop.permute.xlu1 %380 }
  0xc4   : > { %v1884_v35 = vsel %vm849_vm1, %v817_v31, %v465_v32  ;;  %v1888_v36 = vsel %vm816_vm0, %v1878_v30, %v381_v34  ;;  %v379_v48 = vpop.permute.xlu0 %378 }
  0xc5   : > { %v1891_v50 = vsel %vm816_vm0, %v1394_v28, %v379_v48 }
  0xc9   : > { %722 = vrot.lane.b32.xlu2 %v1708_v33, %s1569_s29  ;;  %516 = vrot.lane.b32.xlu1 %v1401_v10, %s1567_s27 }
  0xca   : > { %610 = vrot.lane.b32.xlu0 %v1354_v57, %s1568_s28 }
  0xcb   : > { %v471_v52 = vpop.permute.xlu2 %470  ;;  %v1898_v60 = vpop.permute.xlu1 %386 }
  0xcc   : > { %v1902_v2 = vsel %vm849_vm1, %v1794_v58, %v471_v52  ;;  %v1904_v3 = vpop.permute.xlu0 %384 }
  0xd1   : > { %644 = vrot.lane.b32.xlu2 %v1371_v5, %s1568_s28  ;;  %628 = vrot.lane.b32.xlu1 %v1363_v9, %s1568_s28  ;;  %v1355_v5 = vld [vmem:[%s1639_s25 + $0x92] sm:$0xff] }
  0xd2   : > { %738 = vrot.lane.b32.xlu0 %v1761_v47, %s1569_s29 }
  0xd3   : > { %v477_v16 = vpop.permute.xlu2 %476  ;;  %v393_v20 = vpop.permute.xlu1 %392 }
  0xd4   : > { %v1916_v58 = vsel %vm849_vm1, %v823_v13, %v477_v16  ;;  %v1919_v21 = vsel %vm816_vm0, %v1401_v10, %v393_v20  ;;  %v1921_v22 = vpop.permute.xlu0 %390  ;;  %v826_v10 = vsel %vm816_vm0, %v1747_v44, %v1830_v8 }
  0xd9   : > { %596 = vrot.lane.b32.xlu2 %v1347_v27, %s1568_s28  ;;  %772 = vrot.lane.b32.xlu1 %v1925_v29, %s1569_s29  ;;  %v832_v27 = vsel %vm816_vm0, %v1783_v55, %v1857_v19  ;;  %v1372_v19 = vld [vmem:[%s1639_s25 + $0x15a] sm:$0xff] }
  0xda   : > { %756 = vrot.lane.b32.xlu0 %v1878_v30, %s1569_s29 }
  0xdb   : > { %v483_v31 = vpop.permute.xlu2 %482  ;;  %v399_v32 = vpop.permute.xlu1 %398 }
  0xdc   : > { %v1939_v34 = vsel %vm849_vm1, %v826_v10, %v483_v31  ;;  %v1943_v48 = vsel %vm816_vm0, %v1931_v1, %v399_v32  ;;  %v397_v57 = vpop.permute.xlu0 %396 }
  0xdd   : > { %v1947_v52 = vsel %vm816_vm0, %v1925_v29, %v397_v57 }
  0xe1   : > { %518 = vrot.lane.b32.xlu2 %v171_v23, %s1567_s27  ;;  %502 = vrot.lane.b32.xlu1 %v1394_v28, %s1567_s27  ;;  %v950_v23 = vld [vmem:[%s2378_s1 + $0x10] sm:$0xf]  ;;  %v1364_v28 = vld [vmem:[%s1639_s25 + $0xfa] sm:$0xff] }
  0xe2   : > { %612 = vrot.lane.b32.xlu0 %v1355_v5, %s1568_s28  ;;  %1409 = vmatpush.msk.msra.mxu0 %vm1048_vm2, %v950_v23  ;;  %v1996_v5 = vld [vmem:[%s1639_s25 + $0x111] sm:$0xff] }
  0xe3   : > { %v489_v8 = vpop.permute.xlu2 %488  ;;  %v469_v9 = vpop.permute.xlu1 %468  ;;  %1449 = vmatpush.msk.msra.mxu2 %vm1048_vm2, %v950_v23  ;;  %1450 = vmatpush.msk.msra.mxu3 %vm1048_vm2, %v950_v23 }
  0xe4   : > { %v1955_v13 = vsel %vm849_vm1, %v1842_v14, %v489_v8  ;;  %v1959_v16 = vsel %vm849_vm1, %v1772_v51, %v469_v9  ;;  %v1961_v20 = vpop.permute.xlu0 %466  ;;  %1448 = vmatpush.msk.msra.mxu1 %vm1048_vm2, %v950_v23  ;;  %v949_v51 = vld [vmem:[%s2378_s1 + $0x8] sm:$0xff]  ;;  %v822_v14 = vsel %vm816_vm0, %v1708_v33, %v1738_v41  ;;  %v948_v33 = vld [vmem:[%s2378_s1] sm:$0xff]  ;;  %v824_v23 = vsel %vm816_vm0, %v1727_v39, %v1812_v0 }
  0xe5   : > { %1066 = vmatpush.msra.mxu0 %v949_v51  ;;  %1452 = vmatpush.msra.mxu2 %v949_v51  ;;  %v828_v0 = vsel %vm816_vm0, %v1741_v42, %v1769_v49  ;;  %v831_v49 = vsel %vm816_vm0, %v1758_v46, %v1791_v56 }
  0xe6   : > { %1453 = vmatpush.msra.mxu3 %v949_v51  ;;  %1451 = vmatpush.msra.mxu1 %v949_v51 }
  0xe7   : > { %1067 = vmatpush.msra.mxu0 %v948_v33  ;;  %1455 = vmatpush.msra.mxu2 %v948_v33 }
  0xe8   : > { %1456 = vmatpush.msra.mxu3 %v948_v33  ;;  %1454 = vmatpush.msra.mxu1 %v948_v33 }
  0xe9   : > { %630 = vrot.lane.b32.xlu2 %v1364_v28, %s1568_s28  ;;  %740 = vrot.lane.b32.xlu1 %v1758_v46, %s1569_s29 }
  0xea   : > { %724 = vrot.lane.b32.xlu0 %v1730_v40, %s1569_s29 }
  0xeb   : > { %v495_v10 = vpop.permute.xlu2 %494  ;;  %v475_v31 = vpop.permute.xlu1 %474 }
  0xec   : > { %v1982_v40 = vsel %vm849_vm1, %v832_v27, %v495_v10  ;;  %v1985_v32 = vsel %vm849_vm1, %v822_v14, %v475_v31  ;;  %v473_v57 = vpop.permute.xlu0 %472  ;;  %v1356_v27 = vld [vmem:[%s1639_s25 + $0x9a] sm:$0xff] }
  0xed   : > { %v1992_v41 = vsel %vm849_vm1, %v1721_v37, %v473_v57  ;;  %v835_v37 = vsel %vm816_vm0, %v1803_v62, %v1870_v26  ;;  %v1348_v10 = vld [vmem:[%s1639_s25 + $0x3a] sm:$0xff]  ;;  %v827_v57 = vsel %vm816_vm0, %v1744_v43, %v1825_v6 }
  0xf1   : > { %774 = vrot.lane.b32.xlu2 %v1931_v1, %s1569_s29  ;;  %758 = vrot.lane.b32.xlu1 %v1996_v5, %s1569_s29 }
  0xf2   : > { %646 = vrot.lane.b32.xlu0 %v1372_v19, %s1568_s28 }
  0xf3   : > { %v501_v8 = vpop.permute.xlu2 %500  ;;  %v2006_v9 = vpop.permute.xlu1 %480 }
  0xf4   : > { %v2012_v28 = vsel %vm849_vm1, %v835_v37, %v501_v8  ;;  %v479_v51 = vpop.permute.xlu0 %478  ;;  %v830_v8 = vsel %vm816_vm0, %v1761_v47, %v1839_v12 }
  0xf5   : > { %v2015_v14 = vsel %vm849_vm1, %v824_v23, %v479_v51 }
  0xf9   : > { %504 = vrot.lane.b32.xlu2 %v1878_v30, %s1567_s27  ;;  %614 = vrot.lane.b32.xlu1 %v1356_v27, %s1568_s28  ;;  %v2056_v27 = vld [vmem:[%s1639_s25 + $0x121] sm:$0xff] }
  0xfa   : > { %598 = vrot.lane.b32.xlu0 %v1348_v10, %s1568_s28 }
  0xfb   : > { %v641_v26 = vpop.permute.xlu2 %640  ;;  %v487_v31 = vpop.permute.xlu1 %486 }
  0xfc   : > { %v2030_v33 = vsel %vm849_vm1, %v828_v0, %v487_v31  ;;  %v485_v30 = vpop.permute.xlu0 %484  ;;  %v1357_v0 = vld [vmem:[%s1639_s25 + $0xaa] sm:$0xff] }
  0xfd   : > { %v2033_v19 = vsel %vm849_vm1, %v827_v57, %v485_v30  ;;  %v1349_v31 = vld [vmem:[%s1639_s25 + $0x4a] sm:$0xff]  ;;  %v1405_v57 = vld [vmem:[%s1639_s25 + $0x181] sm:$0xff] }
 0x101   : > { %742 = vrot.lane.b32.xlu2 %v1783_v55, %s1569_s29  ;;  %726 = vrot.lane.b32.xlu1 %v1727_v39, %s1569_s29  ;;  %v1373_v39 = vld [vmem:[%s1639_s25 + $0x16a] sm:$0xff] }
 0x102   : > { %520 = vrot.lane.b32.xlu0 %v1925_v29, %s1567_s27  ;;  %v1365_v29 = vld [vmem:[%s1639_s25 + $0x10a] sm:$0xff] }
 0x103   : > { %v593_v6 = vpop.permute.xlu2 %592  ;;  %v493_v37 = vpop.permute.xlu1 %492 }
 0x104   : > { %v2048_v23 = vsel %vm849_vm1, %v831_v49, %v493_v37  ;;  %v491_v55 = vpop.permute.xlu0 %490  ;;  %v883_v46 = vsel %vm882_vm3, %v1884_v35, %v593_v6  ;;  %v841_v6 = vsel %vm816_vm0, %v2056_v27, %v1904_v3 }
 0x105   : > { %v2051_v51 = vsel %vm849_vm1, %v830_v8, %v491_v55  ;;  %v833_v8 = vsel %vm816_vm0, %v1780_v54, %v1855_v18  ;;  %v143_v18 = vld [vmem:[%s1639_s25 + $0x9] sm:$0xff] }
 0x109   : > { %760 = vrot.lane.b32.xlu2 %v2056_v27, %s1569_s29  ;;  %648 = vrot.lane.b32.xlu1 %v1373_v39, %s1568_s28 }
 0x10a   : > { %632 = vrot.lane.b32.xlu0 %v1365_v29, %s1568_s28 }
 0x10b   : > { %v721_v47 = vpop.permute.xlu2 %720  ;;  %v2064_v56 = vpop.permute.xlu1 %498 }
 0x10c   : > { %v497_v12 = vpop.permute.xlu0 %496  ;;  %v916_v10 = vsel %vm915_vm4, %v883_v46, %v721_v47 }
 0x10d   : > { %1410 = vmatmul.msk.f32.vlgmr.msra.gmra.mxu0 %vm951_vm5, %v916_v10  ;;  %v866_v55 = vsel %vm849_vm1, %v833_v8, %v497_v12  ;;  %v1374_v12 = vld [vmem:[%s1639_s25 + $0x172] sm:$0xff] }
 0x111   : > { %616 = vrot.lane.b32.xlu2 %v1357_v0, %s1568_s28  ;;  %600 = vrot.lane.b32.xlu1 %v1349_v31, %s1568_s28  ;;  %v1366_v0 = vld [vmem:[%s1639_s25 + $0x112] sm:$0xff] }
 0x112   : > { %776 = vrot.lane.b32.xlu0 %v1405_v57, %s1569_s29 }
 0x113   : > { %v643_v30 = vpop.permute.xlu2 %642  ;;  %v625_v49 = vpop.permute.xlu1 %624 }
 0x114   : > { %v513_v35 = vpop.permute.xlu0 %512  ;;  %v899_v46 = vsel %vm882_vm3, %v866_v55, %v625_v49  ;;  %v2110_v55 = vld [vmem:[%s1639_s25 + $0x189] sm:$0xff] }
 0x115   : > { %v874_v37 = vsel %vm849_vm1, %v841_v6, %v513_v35 }
 0x116   : > { %v907_v29 = vsel %vm882_vm3, %v874_v37, %v641_v26  ;;  %v818_v26 = vsel %vm816_vm0, %v143_v18, %v1796_v59  ;;  %v1350_v59 = vld [vmem:[%s1639_s25 + $0x52] sm:$0xff] }
 0x117   : > { %v851_v31 = vsel %vm849_vm1, %v818_v26, %v1961_v20  ;;  %v1358_v18 = vld [vmem:[%s1639_s25 + $0xb2] sm:$0xff] }
 0x119   : > { %728 = vrot.lane.b32.xlu2 %v1724_v38, %s1569_s29  ;;  %522 = vrot.lane.b32.xlu1 %v1931_v1, %s1567_s27 }
 0x11a   : > { %506 = vrot.lane.b32.xlu0 %v1996_v5, %s1567_s27 }
 0x11b   : > { %v595_v3 = vpop.permute.xlu2 %594  ;;  %v769_v39 = vpop.permute.xlu1 %768 }
 0x11c   : > { %v753_v47 = vpop.permute.xlu0 %752  ;;  %v940_v10 = vsel %vm915_vm4, %v907_v29, %v769_v39  ;;  %v884_v49 = vsel %vm882_vm3, %v851_v31, %v595_v3  ;;  %v167_v39 = vld [vmem:[%s1639_s25 + $0x129] sm:$0xff] }
 0x11d   : > { %v932_v1 = vsel %vm915_vm4, %v899_v46, %v753_v47  ;;  %1434 = vmatmul.msk.f32.vlgmr.msra.gmra.mxu3 %vm951_vm5, %v940_v10 }
 0x11e   : > { %1426 = vmatmul.msk.f32.vlgmr.msra.gmra.mxu2 %vm951_vm5, %v932_v1  ;;  %v842_v1 = vsel %vm816_vm0, %v167_v39, %v1898_v60 }
 0x121   : > { %650 = vrot.lane.b32.xlu2 %v1374_v12, %s1568_s28  ;;  %634 = vrot.lane.b32.xlu1 %v1366_v0, %s1568_s28 }
 0x122   : > { %744 = vrot.lane.b32.xlu0 %v1780_v54, %s1569_s29  ;;  %v825_v54 = vsel %vm816_vm0, %v1724_v38, %v1755_v45  ;;  %v834_v45 = vsel %vm816_vm0, %v1777_v53, %v1810_v63  ;;  %v1367_v63 = vld [vmem:[%s1639_s25 + $0x122] sm:$0xff] }
 0x123   : > { %v723_v35 = vpop.permute.xlu2 %722  ;;  %v515_v6 = vpop.permute.xlu1 %514  ;;  %v858_v20 = vsel %vm849_vm1, %v825_v54, %v2006_v9  ;;  %v867_v9 = vsel %vm849_vm1, %v834_v45, %v2064_v56  ;;  %v1359_v54 = vld [vmem:[%s1639_s25 + $0xc2] sm:$0xff]  ;;  %v1368_v45 = vld [vmem:[%s1639_s25 + $0x12a] sm:$0xff] }
 0x124   : > { %v609_v37 = vpop.permute.xlu0 %608  ;;  %v917_v8 = vsel %vm915_vm4, %v884_v49, %v723_v35  ;;  %v875_v38 = vsel %vm849_vm1, %v842_v1, %v515_v6  ;;  %v1407_v35 = vld [vmem:[%s1639_s25 + $0x199] sm:$0xff]  ;;  %v1375_v6 = vld [vmem:[%s1639_s25 + $0x182] sm:$0xff] }
 0x125   : > { %1411 = vmatmul.msk.f32.gmra.mxu0 %vm951_vm5, %v917_v8  ;;  %v891_v46 = vsel %vm882_vm3, %v858_v20, %v609_v37  ;;  %v908_v0 = vsel %vm882_vm3, %v875_v38, %v643_v30  ;;  %v843_v20 = vsel %vm816_vm0, %v1819_v4, %v1853_v17  ;;  %v1376_v38 = vld [vmem:[%s1639_s25 + $0x18a] sm:$0xff] }
 0x129   : > { %602 = vrot.lane.b32.xlu2 %v1350_v59, %s1568_s28  ;;  %778 = vrot.lane.b32.xlu1 %v2110_v55, %s1569_s29 }
 0x12a   : > { %762 = vrot.lane.b32.xlu0 %v167_v39, %s1569_s29 }
 0x12b   : > { %v645_v3 = vpop.permute.xlu2 %644  ;;  %v627_v29 = vpop.permute.xlu1 %626 }
 0x12c   : > { %v737_v47 = vpop.permute.xlu0 %736 }
 0x12d   : > { %v924_v10 = vsel %vm915_vm4, %v891_v46, %v737_v47 }
 0x12e   : > { %1418 = vmatmul.msk.f32.vlgmr.msra.gmra.mxu1 %vm951_vm5, %v924_v10 }
 0x131   : > { %524 = vrot.lane.b32.xlu2 %v1405_v57, %s1567_s27  ;;  %508 = vrot.lane.b32.xlu1 %v2056_v27, %s1567_s27  ;;  %v900_v57 = vsel %vm882_vm3, %v867_v9, %v627_v29  ;;  %v1351_v29 = vld [vmem:[%s1639_s25 + $0x62] sm:$0xff] }
 0x132   : > { %618 = vrot.lane.b32.xlu0 %v1358_v18, %s1568_s28 }
 0x133   : > { %v597_v12 = vpop.permute.xlu2 %596  ;;  %v771_v60 = vpop.permute.xlu1 %770 }
 0x134   : > { %v755_v26 = vpop.permute.xlu0 %754  ;;  %v941_v27 = vsel %vm915_vm4, %v908_v0, %v771_v60  ;;  %v885_v9 = vsel %vm882_vm3, %v1959_v16, %v597_v12  ;;  %v844_v16 = vsel %vm816_vm0, %v1845_v15, %v1921_v22 }
 0x135   : > { %v933_v31 = vsel %vm915_vm4, %v900_v57, %v755_v26  ;;  %1435 = vmatmul.msk.f32.gmra.mxu3 %vm951_vm5, %v941_v27  ;;  %v1360_v26 = vld [vmem:[%s1639_s25 + $0xca] sm:$0xff] }
 0x136   : > { %1427 = vmatmul.msk.f32.gmra.mxu2 %vm951_vm5, %v933_v31  ;;  %v1352_v27 = vld [vmem:[%s1639_s25 + $0x6a] sm:$0xff]  ;;  %v1408_v31 = vld [vmem:[%s1639_s25 + $0x1a1] sm:$0xff]  ;;  %s1212_s25 = sshll.u32 %s1209_s23, 4  ;;  %s1213_s25 = int_to_ptr.hbm [resolvable:$true] %s1212_s25 }
 0x139   : > { %636 = vrot.lane.b32.xlu2 %v1367_v63, %s1568_s28  ;;  %746 = vrot.lane.b32.xlu1 %v1777_v53, %s1569_s29 }
 0x13a   : > { %730 = vrot.lane.b32.xlu0 %v1747_v44, %s1569_s29 }
 0x13b   : > { %v2150_v56 = vpop.permute.xlu2 %518  ;;  %v517_v30 = vpop.permute.xlu1 %516 }
 0x13c   : > { %v611_v49 = vpop.permute.xlu0 %610  ;;  %v876_v46 = vsel %vm849_vm1, %v843_v20, %v517_v30 }
 0x13d   : > { %v892_v8 = vsel %vm882_vm3, %v1939_v34, %v611_v49  ;;  %v909_v10 = vsel %vm882_vm3, %v876_v46, %v645_v3 }
 0x141   : > { %780 = vrot.lane.b32.xlu2 %v1407_v35, %s1569_s29  ;;  %764 = vrot.lane.b32.xlu1 %v1819_v4, %s1569_s29 }
 0x142   : > { %652 = vrot.lane.b32.xlu0 %v1375_v6, %s1568_s28 }
 0x143   : > { %v631_v37 = vpop.permute.xlu2 %630  ;;  %v629_v53 = vpop.permute.xlu1 %628 }
 0x144   : > { %v739_v44 = vpop.permute.xlu0 %738  ;;  %v901_v1 = vsel %vm882_vm3, %v2012_v28, %v629_v53 }
 0x145   : > { %v925_v59 = vsel %vm915_vm4, %v892_v8, %v739_v44 }
 0x146   : > { %1419 = vmatmul.msk.f32.gmra.mxu1 %vm951_vm5, %v925_v59 }
 0x149   : > { %510 = vrot.lane.b32.xlu2 %v167_v39, %s1567_s27  ;;  %620 = vrot.lane.b32.xlu1 %v1359_v54, %s1568_s28 }
 0x14a   : > { %604 = vrot.lane.b32.xlu0 %v1351_v29, %s1568_s28 }
 0x14b   : > { %v775_v34 = vpop.permute.xlu2 %774  ;;  %v773_v47 = vpop.permute.xlu1 %772 }
 0x14c   : > { %v757_v18 = vpop.permute.xlu0 %756  ;;  %v942_v4 = vsel %vm915_vm4, %v909_v10, %v773_v47 }
 0x14d   : > { %v934_v17 = vsel %vm915_vm4, %v901_v1, %v757_v18  ;;  %1436 = vmatmul.msk.f32.gmra.mxu3 %vm951_vm5, %v942_v4 }
 0x14e   : > { %1428 = vmatmul.msk.f32.gmra.mxu2 %vm951_vm5, %v934_v17 }
 0x151   : > { %748 = vrot.lane.b32.xlu2 %v1803_v62, %s1569_s29  ;;  %732 = vrot.lane.b32.xlu1 %v1744_v43, %s1569_s29 }
 0x152   : > { %526 = vrot.lane.b32.xlu0 %v2110_v55, %s1567_s27 }
 0x153   : > { %v505_v39 = vpop.permute.xlu2 %504  ;;  %v503_v28 = vpop.permute.xlu1 %502 }
 0x154   : > { %v613_v3 = vpop.permute.xlu0 %612 }
 0x155   : > { %v893_v43 = vsel %vm882_vm3, %v2033_v19, %v613_v3  ;;  %v836_v19 = vsel %vm816_vm0, %v1800_v61, %v1865_v24  ;;  %v877_v24 = vsel %vm849_vm1, %v844_v16, %v2150_v56 }
 0x156   : > { %v869_v63 = vsel %vm849_vm1, %v836_v19, %v503_v28 }
 0x157   : > { %v902_v49 = vsel %vm882_vm3, %v869_v63, %v631_v37 }
 0x159   : > { %766 = vrot.lane.b32.xlu2 %v1845_v15, %s1569_s29  ;;  %654 = vrot.lane.b32.xlu1 %v1376_v38, %s1568_s28 }
 0x15a   : > { %638 = vrot.lane.b32.xlu0 %v1368_v45, %s1568_s28 }
 0x15b   : > { %v743_v62 = vpop.permute.xlu2 %742  ;;  %v741_v55 = vpop.permute.xlu1 %740 }
 0x15c   : > { %v725_v60 = vpop.permute.xlu0 %724  ;;  %v926_v0 = vsel %vm915_vm4, %v893_v43, %v741_v55 }
 0x15d   : > { %v918_v57 = vsel %vm915_vm4, %v885_v9, %v725_v60  ;;  %1420 = vmatmul.msk.f32.gmra.mxu1 %vm951_vm5, %v926_v0 }
 0x15e   : > { %1412 = vmatmul.msk.f32.gmra.mxu0 %vm951_vm5, %v918_v57 }
 0x161   : > { %622 = vrot.lane.b32.xlu2 %v1360_v26, %s1568_s28  ;;  %606 = vrot.lane.b32.xlu1 %v1352_v27, %s1568_s28  ;;  %s1516_s28 = sshra.s32 %s1213_s25, 4  ;;  %s1517_s28 = int_to_ptr.hbm [resolvable:$true] %s1516_s28 }
 0x162   : > { %782 = vrot.lane.b32.xlu0 %v1408_v31, %s1569_s29  ;;  %s1518_s13 = scalar_lea.hbm %s1517_s28, 256  ;;  %p1523_p0 = scmp.lt.s32.totalorder %s1517_s28, %s2379_s2 }
 0x163   : > { %v761_v12 = vpop.permute.xlu2 %760  ;;  %v759_v30 = vpop.permute.xlu1 %758  ;;  %p1519_p11 = scmp.ne.s32.totalorder %s1517_s28, %s1518_s13  ;;  %p1524_p1 = scmp.lt.s32.totalorder %s1522_s3, %s1518_s13 }
 0x164   : > { %v647_v35 = vpop.permute.xlu0 %646  ;;  %v935_v6 = vsel %vm915_vm4, %v902_v49, %v759_v30 }
 0x165   : > { %v910_v53 = vsel %vm882_vm3, %v877_v24, %v647_v35  ;;  %1429 = vmatmul.msk.f32.gmra.mxu2 %vm951_vm5, %v935_v6  ;;  %p1520_p12 = pnand %p1519_p11, %p1624_p5  ;;  %p1525_p2 = por %p1524_p1, %p1523_p0 }
 0x166   : > { %v943_v8 = vsel %vm915_vm4, %v910_v53, %v775_v34 }
 0x167   : > { %1437 = vmatmul.msk.f32.gmra.mxu3 %vm951_vm5, %v943_v8  ;;  %p1521_p13 = pneg %p1520_p12 }
 0x169   : > { %750 = vrot.lane.b32.xlu1 %v1800_v61, %s1569_s29  ;;  %p1526_p3 = pnand %p1525_p2, %p1521_p13 }
 0x16a   : > { %734 = vrot.lane.b32.xlu0 %v1741_v42, %s1569_s29 }
 0x16b   : > { %v615_v15 = vpop.permute.xlu1 %614  ;;  %v617_v37 = vpop.permute.xlu2 %616 }
 0x16c   : > { %v894_v22 = vsel %vm882_vm3, %v2030_v33, %v615_v15  ;;  %v599_v56 = vpop.permute.xlu0 %598  ;;  %v870_v33 = vsel %vm849_vm1, %v1828_v7, %v505_v39  ;;  %v895_v45 = vsel %vm882_vm3, %v1955_v13, %v617_v37 }
 0x16d   : > { %v927_v44 = vsel %vm915_vm4, %v894_v22, %v743_v62  ;;  %v886_v59 = vsel %vm882_vm3, %v1902_v2, %v599_v56 }
 0x16e   : > { %1421 = vmatmul.msk.f32.gmra.mxu1 %vm951_vm5, %v927_v44 }
 0x173   : > { %v727_v54 = vpop.permute.xlu1 %726  ;;  %v729_v42 = vpop.permute.xlu2 %728 }
 0x174   : > { %v521_v20 = vpop.permute.xlu0 %520  ;;  %v919_v61 = vsel %vm915_vm4, %v886_v59, %v727_v54 }
 0x175   : > { %1413 = vmatmul.msk.f32.gmra.mxu0 %vm951_vm5, %v919_v61  ;;  %v878_v10 = vsel %vm849_vm1, %v1919_v21, %v521_v20 }
 0x17b   : > { %v649_v29 = vpop.permute.xlu1 %648  ;;  %v651_v2 = vpop.permute.xlu2 %650 }
 0x17c   : > { %v633_v46 = vpop.permute.xlu0 %632  ;;  %v911_v18 = vsel %vm882_vm3, %v878_v10, %v649_v29 }
 0x17d   : > { %v903_v34 = vsel %vm882_vm3, %v870_v33, %v633_v46 }
 0x17e   : > { %v936_v47 = vsel %vm915_vm4, %v903_v34, %v761_v12 }
 0x17f   : > { %1430 = vmatmul.msk.f32.gmra.mxu2 %vm951_vm5, %v936_v47 }
 0x183   : > { %v601_v1 = vpop.permute.xlu1 %600  ;;  %v603_v3 = vpop.permute.xlu2 %602 }
 0x184   : > { %v887_v4 = vsel %vm882_vm3, %v1992_v41, %v601_v1  ;;  %v777_v17 = vpop.permute.xlu0 %776  ;;  %v888_v24 = vsel %vm882_vm3, %v1985_v32, %v603_v3 }
 0x185   : > { %v944_v7 = vsel %vm915_vm4, %v911_v18, %v777_v17  ;;  %v920_v39 = vsel %vm915_vm4, %v887_v4, %v729_v42 }
 0x186   : > { %1438 = vmatmul.msk.f32.gmra.mxu3 %vm951_vm5, %v944_v7  ;;  %1414 = vmatmul.msk.f32.gmra.mxu0 %vm951_vm5, %v920_v39 }
 0x18a   : > { %v1069_v28 = vpop.f32.mrf.mxu0 }
 0x18b   : > { %1165 = vst [vmem:[%s2248_s16] sm:$0xff] %v1069_v28  ;;  %v523_v21 = vpop.permute.xlu1 %522  ;;  %v525_v62 = vpop.permute.xlu2 %524 }
 0x18c   : > { %v507_v38 = vpop.permute.xlu0 %506  ;;  %v879_v9 = vsel %vm849_vm1, %v1868_v25, %v523_v21 }
 0x18d   : > { %v871_v60 = vsel %vm849_vm1, %v1891_v50, %v507_v38  ;;  %v912_v57 = vsel %vm882_vm3, %v879_v9, %v651_v2 }
 0x193   : > { %v635_v41 = vpop.permute.xlu1 %634  ;;  %v637_v25 = vpop.permute.xlu2 %636 }
 0x194   : > { %v745_v43 = vpop.permute.xlu0 %744  ;;  %v904_v13 = vsel %vm882_vm3, %v871_v60, %v635_v41 }
 0x195   : > { %v928_v55 = vsel %vm915_vm4, %v895_v45, %v745_v43 }
 0x196   : > { %1422 = vmatmul.msk.f32.gmra.mxu1 %vm951_vm5, %v928_v55 }
 0x19b   : > { %v779_v0 = vpop.permute.xlu1 %778  ;;  %v781_v30 = vpop.permute.xlu2 %780 }
 0x19c   : > { %v763_v26 = vpop.permute.xlu0 %762  ;;  %v945_v27 = vsel %vm915_vm4, %v912_v57, %v779_v0 }
 0x19d   : > { %v937_v19 = vsel %vm915_vm4, %v904_v13, %v763_v26  ;;  %1439 = vmatmul.msk.f32.gmra.mxu3 %vm951_vm5, %v945_v27 }
 0x19e   : > { %1431 = vmatmul.msk.f32.gmra.mxu2 %vm951_vm5, %v937_v19 }
 0x1a0   : > { %v1141_v31 = vpop.f32.mrf.mxu3 }
 0x1a1   : > { %v1117_v63 = vpop.f32.mrf.mxu2  ;;  %1189 = vst [vmem:[%s2248_s16 + $0xc0] sm:$0xff] %v1141_v31 }
 0x1a2   : > { %1181 = vst [vmem:[%s2248_s16 + $0x80] sm:$0xff] %v1117_v63  ;;  %v1072_v50 = vpop.f32.mrf.mxu0 }
 0x1a3   : > { %1166 = vst [vmem:[%s2248_s16 + $0x8] sm:$0xff] %v1072_v50  ;;  %v509_v16 = vpop.permute.xlu1 %508  ;;  %v511_v32 = vpop.permute.xlu2 %510 }
 0x1a4   : > { %v619_v12 = vpop.permute.xlu0 %618  ;;  %v872_v22 = vsel %vm849_vm1, %v1888_v36, %v509_v16 }
 0x1a5   : > { %v896_v35 = vsel %vm882_vm3, %v2051_v51, %v619_v12  ;;  %v880_v51 = vsel %vm849_vm1, %v1947_v52, %v525_v62  ;;  %v905_v44 = vsel %vm882_vm3, %v872_v22, %v637_v25 }
 0x1ab   : > { %v1093_v49 = vpop.f32.mrf.mxu1  ;;  %v747_v6 = vpop.permute.xlu1 %746 }
 0x1ac   : > { %1173 = vst [vmem:[%s2248_s16 + $0x40] sm:$0xff] %v1093_v49  ;;  %v731_v53 = vpop.permute.xlu0 %730  ;;  %v929_v15 = vsel %vm915_vm4, %v896_v35, %v747_v6  ;;  %v749_v29 = vpop.permute.xlu2 %748 }
 0x1ad   : > { %v921_v8 = vsel %vm915_vm4, %v888_v24, %v731_v53  ;;  %1423 = vmatmul.msk.f32.gmra.mxu1 %vm951_vm5, %v929_v15 }
 0x1ae   : > { %1415 = vmatmul.msk.f32.gmra.mxu0 %vm951_vm5, %v921_v8 }
 0x1b3   : > { %v765_v56 = vpop.permute.xlu1 %764 }
 0x1b4   : > { %v653_v37 = vpop.permute.xlu0 %652  ;;  %v938_v54 = vsel %vm915_vm4, %v905_v44, %v765_v56  ;;  %v767_v7 = vpop.permute.xlu2 %766 }
 0x1b5   : > { %v913_v59 = vsel %vm882_vm3, %v880_v51, %v653_v37  ;;  %1432 = vmatmul.msk.f32.gmra.mxu2 %vm951_vm5, %v938_v54 }
 0x1b6   : > { %v946_v20 = vsel %vm915_vm4, %v913_v59, %v781_v30 }
 0x1b7   : > { %1440 = vmatmul.msk.f32.gmra.mxu3 %vm951_vm5, %v946_v20 }
 0x1b8   : > { %v1144_v36 = vpop.f32.mrf.mxu3 }
 0x1b9   : > { %v1120_v61 = vpop.f32.mrf.mxu2  ;;  %1190 = vst [vmem:[%s2248_s16 + $0xc8] sm:$0xff] %v1144_v36 }
 0x1ba   : > { %1182 = vst [vmem:[%s2248_s16 + $0x88] sm:$0xff] %v1120_v61 }
 0x1bb   : > { %v621_v52 = vpop.permute.xlu1 %620 }
 0x1bc   : > { %v605_v42 = vpop.permute.xlu0 %604  ;;  %v897_v33 = vsel %vm882_vm3, %v2048_v23, %v621_v52  ;;  %v840_v23 = vsel %vm816_vm0, %v1996_v5, %v1837_v11  ;;  %v623_v45 = vpop.permute.xlu2 %622 }
 0x1bd   : > { %v930_v46 = vsel %vm915_vm4, %v897_v33, %v749_v29  ;;  %v889_v47 = vsel %vm882_vm3, %v1916_v58, %v605_v42  ;;  %v873_v18 = vsel %vm849_vm1, %v840_v23, %v511_v32  ;;  %v898_v55 = vsel %vm882_vm3, %v1982_v40, %v623_v45 }
 0x1be   : > { %1424 = vmatmul.msk.f32.gmra.mxu1 %vm951_vm5, %v930_v46 }
 0x1c3   : > { %v1096_v34 = vpop.f32.mrf.mxu1  ;;  %v733_v2 = vpop.permute.xlu1 %732 }
 0x1c4   : > { %1174 = vst [vmem:[%s2248_s16 + $0x48] sm:$0xff] %v1096_v34  ;;  %v527_v10 = vpop.permute.xlu0 %526  ;;  %v922_v1 = vsel %vm915_vm4, %v889_v47, %v733_v2 }
 0x1c5   : > { %1416 = vmatmul.msk.f32.gmra.mxu0 %vm951_vm5, %v922_v1  ;;  %v881_v11 = vsel %vm849_vm1, %v1943_v48, %v527_v10 }
 0x1cb   : > { %v655_v4 = vpop.permute.xlu1 %654 }
 0x1cc   : > { %v639_v17 = vpop.permute.xlu0 %638  ;;  %v914_v5 = vsel %vm882_vm3, %v881_v11, %v655_v4 }
 0x1cd   : > { %v906_v58 = vsel %vm882_vm3, %v873_v18, %v639_v17 }
 0x1ce   : > { %v939_v39 = vsel %vm915_vm4, %v906_v58, %v767_v7 }
 0x1cf   : > { %1433 = vmatmul.msk.f32.gmra.mxu2 %vm951_vm5, %v939_v39 }
 0x1d0   : > { %v1147_v28 = vpop.f32.mrf.mxu3 }
 0x1d1   : > { %v1123_v3 = vpop.f32.mrf.mxu2  ;;  %1191 = vst [vmem:[%s2248_s16 + $0xd0] sm:$0xff] %v1147_v28 }
 0x1d2   : > { %1183 = vst [vmem:[%s2248_s16 + $0x90] sm:$0xff] %v1123_v3 }
 0x1d3   : > { %v607_v21 = vpop.permute.xlu1 %606 }
 0x1d4   : > { %v783_v38 = vpop.permute.xlu0 %782  ;;  %v890_v48 = vsel %vm882_vm3, %v2015_v14, %v607_v21 }
 0x1d5   : > { %v947_v41 = vsel %vm915_vm4, %v914_v5, %v783_v38 }
 0x1d6   : > { %1441 = vmatmul.msk.f32.gmra.mxu3 %vm951_vm5, %v947_v41 }
 0x1da   : > { %v1099_v43 = vpop.f32.mrf.mxu1 }
 0x1db   : > { %v1075_v62 = vpop.f32.mrf.mxu0  ;;  %1175 = vst [vmem:[%s2248_s16 + $0x50] sm:$0xff] %v1099_v43  ;;  %v751_v9 = vpop.permute.xlu1 %750 }
 0x1dc   : > { %1167 = vst [vmem:[%s2248_s16 + $0x10] sm:$0xff] %v1075_v62  ;;  %v735_v60 = vpop.permute.xlu0 %734  ;;  %v931_v57 = vsel %vm915_vm4, %v898_v55, %v751_v9 }
 0x1dd   : > { %v923_v0 = vsel %vm915_vm4, %v890_v48, %v735_v60  ;;  %1425 = vmatmul.msk.f32.gmra.mxu1 %vm951_vm5, %v931_v57 }
 0x1de   : > { %1417 = vmatmul.msk.f32.gmra.mxu0 %vm951_vm5, %v923_v0 }
 0x1e8   : > { %v1126_v40 = vpop.f32.mrf.mxu2 }
 0x1e9   : > { %1184 = vst [vmem:[%s2248_s16 + $0x98] sm:$0xff] %v1126_v40 }
 0x1ea   : > { %v1150_v13 = vpop.f32.mrf.mxu3 }
 0x1eb   : > { %1192 = vst [vmem:[%s2248_s16 + $0xd8] sm:$0xff] %v1150_v13  ;;  %v1102_v14 = vpop.f32.mrf.mxu1 }
 0x1ec   : > { %1176 = vst [vmem:[%s2248_s16 + $0x58] sm:$0xff] %v1102_v14 }
 0x1f2   : > { %v1078_v26 = vpop.f32.mrf.mxu0 }
 0x1f3   : > { %1168 = vst [vmem:[%s2248_s16 + $0x18] sm:$0xff] %v1078_v26 }
 0x202   : > { %v1129_v27 = vpop.f32.mrf.mxu2 }
 0x203   : > { %1185 = vst [vmem:[%s2248_s16 + $0xa0] sm:$0xff] %v1129_v27  ;;  %v1081_v19 = vpop.f32.mrf.mxu0 }
 0x204   : > { %1169 = vst [vmem:[%s2248_s16 + $0x20] sm:$0xff] %v1081_v19 }
 0x209   : > { %v1153_v25 = vpop.f32.mrf.mxu3 }
 0x20a   : > { %1193 = vst [vmem:[%s2248_s16 + $0xe0] sm:$0xff] %v1153_v25 }
 0x213   : > { %v1105_v31 = vpop.f32.mrf.mxu1 }
 0x214   : > { %1177 = vst [vmem:[%s2248_s16 + $0x60] sm:$0xff] %v1105_v31 }
 0x220   : > { %v1156_v63 = vpop.f32.mrf.mxu3 }
 0x221   : > { %v1132_v50 = vpop.f32.mrf.mxu2  ;;  %1194 = vst [vmem:[%s2248_s16 + $0xe8] sm:$0xff] %v1156_v63 }
 0x222   : > { %1186 = vst [vmem:[%s2248_s16 + $0xa8] sm:$0xff] %v1132_v50 }
 0x22a   : > { %v1108_v12 = vpop.f32.mrf.mxu1 }
 0x22b   : > { %v1084_v16 = vpop.f32.mrf.mxu0  ;;  %1178 = vst [vmem:[%s2248_s16 + $0x68] sm:$0xff] %v1108_v12 }
 0x22c   : > { %1170 = vst [vmem:[%s2248_s16 + $0x28] sm:$0xff] %v1084_v16 }
 0x238   : > { %v1135_v30 = vpop.f32.mrf.mxu2 }
 0x239   : > { %1187 = vst [vmem:[%s2248_s16 + $0xb0] sm:$0xff] %v1135_v30 }
 0x23a   : > { %v1159_v49 = vpop.f32.mrf.mxu3 }
 0x23b   : > { %1195 = vst [vmem:[%s2248_s16 + $0xf0] sm:$0xff] %v1159_v49  ;;  %v1111_v24 = vpop.f32.mrf.mxu1 }
 0x23c   : > { %1179 = vst [vmem:[%s2248_s16 + $0x70] sm:$0xff] %v1111_v24 }
 0x242   : > { %v1087_v35 = vpop.f32.mrf.mxu0 }
 0x243   : > { %1171 = vst [vmem:[%s2248_s16 + $0x30] sm:$0xff] %v1087_v35 }
 0x252   : > { %v1138_v6 = vpop.f32.mrf.mxu2 }
 0x253   : > { %1188 = vst [vmem:[%s2248_s16 + $0xb8] sm:$0xff] %v1138_v6 }
 0x259   : > { %v1162_v53 = vpop.f32.mrf.mxu3 }
 0x25a   : > { %1196 = vst [vmem:[%s2248_s16 + $0xf8] sm:$0xff] %v1162_v53  ;;  %v1114_v15 = vpop.f32.mrf.mxu1 }
 0x25b   : > { %v1090_v8 = vpop.f32.mrf.mxu0  ;;  %1180 = vst [vmem:[%s2248_s16 + $0x78] sm:$0xff] %v1114_v15 }
 0x25c   : > { %1172 = vst [vmem:[%s2248_s16 + $0x38] sm:$0xff] %v1090_v8 }
 0x25d   : > { %1529 = shalt.err (!%p1526_p3)
}
 0x25e   : > { %s1570_s6 = smov 128  }
 0x25f   : > { %1458 = dma.vmem_to_hbm [thread:$0]  (%p1624_p5), %s1211_s24, 4096, %s1213_s25, %s1198_s26, %s1570_s6, %s1570_s6, %s1567_s27  }
 0x260 PF: > { %p1464_p4 = scmp.ge.s32.totalorder %s1564_s12, 2  ;;  %s1227_s7 = sand.u32 1, %s1552_s9  }
 0x261   : > { %s1228_s8 = scalar_lea.sflag [#allocation3], %s1227_s7 }
 0x262   : > { %p1461_p7 = pnand %p1464_p4, %p1628_p6 }
 0x264   : > { %p1462_p8 = pneg %p1461_p7 }
 0x266   : > { %1547 = dma.done.wait (%p1462_p8), %s1228_s8, 4096  }
 0x267   : > { %1549 = vsyncadd (%p1462_p8), %s1228_s8, 4294963200  ;;  %p12_p9 = scmp.ge.s32.totalorder %s1611_s15, 4   ;;  %s2382_s9 = smov %s1556_s10 }
 0x268   : > { %s2383_s10 = smov %s1560_s11  ;;  %s2384_s11 = smov %s1622_s18 }
 0x269   : > { %s2385_s12 = smov %s1611_s15  ;;  %14 = sbr.rel (!%p12_p9) target bundleno = 3 (0x3), region = 65 }
 0x26e   :  { %1234 = vsyncpa [#allocation3], 1 }
 0x26f   :  { %1236 = vsyncpa [#allocation3 + $0x1], 1 }

</bundles_post_ra>
